<compile_context>
chip_gen: v5e
topology: v5e:2x2
jax: 0.10.0
libtpu: 0.0.40
codegen_flags: <defaults>
</compile_context>

<pallas_src>
import functools

import jax
import jax.numpy as jnp
from jax import lax
from jax.experimental import pallas as pl
from jax.experimental.pallas import tpu as pltpu


_LANE_WIDTH = 512          # lanes per row of the channel-interleaved flat layout (128 priors/row)
_DEFAULT_TILE_ROWS = 512   # rows per grid step -> 1 MiB f32 block per location input
_NUM_SPLITS = 2            # leading "parallel" grid axis -> 2 TensorCores on v7x


def _round_up(x: int, m: int) -> int:
    return ((x + m - 1) // m) * m


def _consis_kernel(p_ref, pf_ref, mask_ref, out_ref, acc_ref, sign_ref):
    """One grid step: accumulate masked squared (tanh-form) sigmoid diffs for this split."""
    j = pl.program_id(1)

    @pl.when(j == 0)
    def _init():
        acc_ref[...] = jnp.zeros_like(acc_ref)
        # channel = lane & 3 (layout is [x, y, w, h] interleaved along lanes);
        # channels 0,1 compare against sigmoid(-pf) -> sign -1, channels 2,3 -> +1.
        lane = lax.broadcasted_iota(jnp.int32, sign_ref.shape, 1)
        sign_ref[...] = jnp.where((lane & 3) < 2, -1.0, 1.0).astype(jnp.float32)

    p = p_ref[...].astype(jnp.float32)               # (tile_rows, 512)
    pf = pf_ref[...].astype(jnp.float32)             # (tile_rows, 512)
    m = mask_ref[...].astype(jnp.float32)            # (tile_rows, 512) positives, per element

    # sigmoid(a) - sigmoid(s*b) = 0.5*(tanh(a/2) - s*tanh(b/2)); the resulting 0.25 factor
    # from squaring is applied once in the wrapper epilogue.
    t_p = jnp.tanh(0.5 * p)
    t_f = jnp.tanh(0.5 * pf)
    d = t_p - sign_ref[...] * t_f

    # Pure lane-parallel (VPU) accumulation in f32; no cross-lane work in the steady state.
    acc_ref[...] = acc_ref[...] + d * d * m

    @pl.when(j == pl.num_programs(1) - 1)
    def _finalize():
        acc = acc_ref[...]
        chan = lax.broadcasted_iota(jnp.int32, acc.shape, 1) & 3
        u_x = jnp.sum(jnp.where(chan == 0, acc, 0.0))
        u_y = jnp.sum(jnp.where(chan == 1, acc, 0.0))
        u_wh = jnp.sum(jnp.where(chan >= 2, acc, 0.0))
        # Pack [u_x, u_y, u_wh] into lanes 0..2 and store the full (8, 128) block once.
        lane = lax.broadcasted_iota(jnp.int32, out_ref.shape, 1)
        out_ref[...] = jnp.where(lane == 0, u_x,
                       jnp.where(lane == 1, u_y,
                       jnp.where(lane == 2, u_wh, 0.0))).astype(jnp.float32)


@functools.partial(jax.jit, static_argnames=("tile_rows", "num_splits"))
def consistency_loss_lrud(predicted_locations, predicted_locations_flip, labels,
                          *, tile_rows=None, num_splits=_NUM_SPLITS):
    """Pallas TPU implementation of the SSD flip-consistency loss."""
    b, num_priors, c = predicted_locations.shape
    assert c == 4, "expected (batch, num_priors, 4) predicted locations"
    n = b * num_priors
    total = 4 * n

    pos = labels.reshape(-1) > 0
    npos = jnp.sum(pos.astype(jnp.float32))
    # Per-element positive mask in the same channel-interleaved flat order as the locations
    # (bf16 halves the mask HBM traffic; values 0/1 are exact).
    mask = jnp.broadcast_to(pos[:, None], (n, 4)).astype(jnp.bfloat16).reshape(-1)

    # Natural flat order [prior0_x, prior0_y, prior0_w, prior0_h, prior1_x, ...]; no transpose.
    p = predicted_locations.reshape(-1)
    pf = predicted_locations_flip.reshape(-1)

    rows = pl.cdiv(total, _LANE_WIDTH)
    if tile_rows is None:
        tile_rows = min(_DEFAULT_TILE_ROWS,
                        _round_up(max(pl.cdiv(rows, num_splits), 1), 16))
    tile_rows = _round_up(tile_rows, 16)   # bf16 mask block: sublane multiple of 16
    rows_pad = _round_up(max(rows, 1), tile_rows * num_splits)
    pad = rows_pad * _LANE_WIDTH - total
    if pad:
        p = jnp.pad(p, (0, pad))
        pf = jnp.pad(pf, (0, pad))
        mask = jnp.pad(mask, (0, pad))     # padded mask 0 -> contributes nothing
    p = p.reshape(rows_pad, _LANE_WIDTH)
    pf = pf.reshape(rows_pad, _LANE_WIDTH)
    mask = mask.reshape(rows_pad, _LANE_WIDTH)
    tiles_per_split = rows_pad // (tile_rows * num_splits)

    def row_map(s, j):
        return (s * tiles_per_split + j, 0)

    grid_spec = pltpu.PrefetchScalarGridSpec(
        num_scalar_prefetch=0,
        grid=(num_splits, tiles_per_split),
        in_specs=[
            pl.BlockSpec((tile_rows, _LANE_WIDTH), row_map),
            pl.BlockSpec((tile_rows, _LANE_WIDTH), row_map),
            pl.BlockSpec((tile_rows, _LANE_WIDTH), row_map),
        ],
        out_specs=pl.BlockSpec((8, 128), lambda s, j: (s, 0)),
        scratch_shapes=[
            pltpu.VMEM((tile_rows, _LANE_WIDTH), jnp.float32),   # masked sq-diff accumulator
            pltpu.VMEM((tile_rows, _LANE_WIDTH), jnp.float32),   # per-channel sign pattern
        ],
    )

    partials = pl.pallas_call(
        _consis_kernel,
        out_shape=jax.ShapeDtypeStruct((num_splits * 8, 128), jnp.float32),
        grid_spec=grid_spec,
        compiler_params=pltpu.CompilerParams(
            dimension_semantics=("parallel", "arbitrary"),
        ),
    )(p, pf, mask)

    # Tiny epilogue: combine per-split partial sums -> scalar loss.
    parts = partials.reshape(num_splits, 8, 128)[:, 0, :3]     # (num_splits, 3)
    u = jnp.sum(parts, axis=0)
    u_x, u_y, u_wh = u[0], u[1], u[2]
    # 0.25 restores sigmoid-scale from the tanh form; Npos == 0 -> 0/0 = NaN like torch.mean.
    return 0.25 * (u_x / npos + u_y / npos + u_wh / (2.0 * npos)) / 3.0


class ConsistencyLossLRUD:
    """Mirrors the PyTorch module interface: __call__(pred, pred_flip) -> scalar loss."""

    def __init__(self, neg_pos_ratio):
        # neg_pos_ratio only feeds the hard-negative-mining mask, which the reference
        # forward never uses; kept for API compatibility.
        self.neg_pos_ratio = neg_pos_ratio

    def __call__(self, pred, pred_flip):
        confidence, predicted_locations, labels, gt_locations = pred
        _, predicted_locations_flip, _, _ = pred_flip
        del confidence, gt_locations
        # TODO(synk): hard_negative_mining / log_softmax no-grad block is dead code; omitted.
        return consistency_loss_lrud(predicted_locations, predicted_locations_flip, labels)


def _reference_loss(predicted_locations, predicted_locations_flip, labels):
    """Pure-JAX reference (masked-mean form of the PyTorch gather+mean)."""
    p = predicted_locations.reshape(-1, 4).astype(jnp.float32)
    pf = predicted_locations_flip.reshape(-1, 4).astype(jnp.float32)
    w = (labels.reshape(-1) > 0).astype(jnp.float32)
    npos = jnp.sum(w)
    sig = jax.nn.sigmoid
    cx = jnp.sum(w * (sig(p[:, 0]) - sig(-pf[:, 0])) ** 2) / npos
    cy = jnp.sum(w * (sig(p[:, 1]) - sig(-pf[:, 1])) ** 2) / npos
    cwh = jnp.sum(w[:, None] * (sig(p[:, 2:]) - sig(pf[:, 2:])) ** 2) / (2.0 * npos)
    return (cx + cy + cwh) / 3.0


if __name__ == "__main__":
    key = jax.random.PRNGKey(0)
    k1, k2, k3, k4, k5, k6 = jax.random.split(key, 6)

    batch, num_priors, num_classes = 2, 64, 3
    confidence = jax.random.normal(k1, (batch, num_priors, num_classes), jnp.float32)
    predicted_locations = jax.random.normal(k2, (batch, num_priors, 4), jnp.float32)
    labels = jax.random.randint(k3, (batch, num_priors), 0, num_classes, dtype=jnp.int32)
    gt_locations = jax.random.normal(k4, (batch, num_priors, 4), jnp.float32)

    confidence_flip = jax.random.normal(k5, (batch, num_priors, num_classes), jnp.float32)
    predicted_locations_flip = jax.random.normal(k6, (batch, num_priors, 4), jnp.float32)

    pred = (confidence, predicted_locations, labels, gt_locations)
    pred_flip = (confidence_flip, predicted_locations_flip, labels, gt_locations)

    loss_fn = ConsistencyLossLRUD(neg_pos_ratio=3)
    loss = jax.block_until_ready(loss_fn(pred, pred_flip))

    ref = jax.block_until_ready(
        _reference_loss(predicted_locations, predicted_locations_flip, labels))

    assert bool(jnp.isfinite(loss)), ("non-finite loss", loss)
    assert bool(jnp.allclose(loss, ref, rtol=2e-4, atol=2e-5)), (loss, ref)
    print("KERNEL_OK")
</pallas_src>

<mosaic_0001>
module attributes {stable_mosaic.version = 11 : i64} {
  func.func @_consis_kernel(%arg0: i32, %arg1: i32, %arg2: memref<16x512xf32, #tpu.memory_space<vmem>>, %arg3: memref<16x512xf32, #tpu.memory_space<vmem>>, %arg4: memref<16x512xbf16, #tpu.memory_space<vmem>>, %arg5: memref<8x128xf32, #tpu.memory_space<vmem>>, %arg6: memref<16x512xf32, #tpu.memory_space<vmem>>, %arg7: memref<16x512xf32, #tpu.memory_space<vmem>>) attributes {dimension_semantics = [#tpu.dimension_semantics<parallel>, #tpu.dimension_semantics<arbitrary>], iteration_bounds = array<i64: 2, 1>, scalar_prefetch = 0 : i64, scratch_operands = 2 : i64, tpu.core_type = #tpu.core_type<tc>, window_params = [{transform_indices = @transform_0, window_bounds = array<i64: 16, 512>}, {transform_indices = @transform_1, window_bounds = array<i64: 16, 512>}, {transform_indices = @transform_2, window_bounds = array<i64: 16, 512>}, {transform_indices = @transform_3, window_bounds = array<i64: 8, 128>}]} {
    %c0_i32 = arith.constant 0 : i32
    %0 = arith.cmpi eq, %arg1, %c0_i32 : i32
    %1 = arith.extui %0 : i1 to i32
    %c0_i32_0 = arith.constant 0 : i32
    %2 = arith.cmpi ne, %1, %c0_i32_0 : i32
    scf.if %2 {
      %cst_15 = arith.constant 0.000000e+00 : f32
      %24 = vector.broadcast %cst_15 : f32 to vector<16x512xf32>
      %c0_16 = arith.constant 0 : index
      %c0_17 = arith.constant 0 : index
      %25 = vector.load %arg6[%c0_16, %c0_17] : memref<16x512xf32, #tpu.memory_space<vmem>>, vector<16x512xf32>
      tpu.vector_store %arg6[%c0_16, %c0_17], %24 {strides = array<i32>} : memref<16x512xf32, #tpu.memory_space<vmem>>, vector<16x512xf32>,
      %26 = tpu.iota {dimensions = array<i32: 1>} : vector<16x512xi32>
      %c3_i32 = arith.constant 3 : i32
      %27 = vector.broadcast %c3_i32 : i32 to vector<16x512xi32>
      %28 = arith.andi %26, %27 : vector<16x512xi32>
      %c2_i32 = arith.constant 2 : i32
      %29 = vector.broadcast %c2_i32 : i32 to vector<16x512xi32>
      %30 = arith.cmpi slt, %28, %29 : vector<16x512xi32>
      %cst_18 = arith.constant -1.000000e+00 : f32
      %cst_19 = arith.constant 1.000000e+00 : f32
      %31 = vector.broadcast %cst_18 : f32 to vector<16x512xf32>
      %32 = vector.broadcast %cst_19 : f32 to vector<16x512xf32>
      %33 = arith.select %30, %31, %32 : vector<16x512xi1>, vector<16x512xf32>
      %c0_20 = arith.constant 0 : index
      %c0_21 = arith.constant 0 : index
      %34 = vector.load %arg7[%c0_20, %c0_21] : memref<16x512xf32, #tpu.memory_space<vmem>>, vector<16x512xf32>
      tpu.vector_store %arg7[%c0_20, %c0_21], %33 {strides = array<i32>} : memref<16x512xf32, #tpu.memory_space<vmem>>, vector<16x512xf32>,
    } else {
    }
    %c0 = arith.constant 0 : index
    %c0_1 = arith.constant 0 : index
    %3 = vector.load %arg2[%c0, %c0_1] : memref<16x512xf32, #tpu.memory_space<vmem>>, vector<16x512xf32>
    %c0_2 = arith.constant 0 : index
    %c0_3 = arith.constant 0 : index
    %4 = vector.load %arg3[%c0_2, %c0_3] : memref<16x512xf32, #tpu.memory_space<vmem>>, vector<16x512xf32>
    %c0_4 = arith.constant 0 : index
    %c0_5 = arith.constant 0 : index
    %5 = vector.load %arg4[%c0_4, %c0_5] : memref<16x512xbf16, #tpu.memory_space<vmem>>, vector<16x512xbf16>
    %6 = arith.extf %5 : vector<16x512xbf16> to vector<16x512xf32>
    %cst = arith.constant 5.000000e-01 : f32
    %7 = vector.broadcast %cst : f32 to vector<16x512xf32>
    %8 = arith.mulf %7, %3 : vector<16x512xf32>
    %9 = math.tanh %8 : vector<16x512xf32>
    %cst_6 = arith.constant 5.000000e-01 : f32
    %10 = vector.broadcast %cst_6 : f32 to vector<16x512xf32>
    %11 = arith.mulf %10, %4 : vector<16x512xf32>
    %12 = math.tanh %11 : vector<16x512xf32>
    %c0_7 = arith.constant 0 : index
    %c0_8 = arith.constant 0 : index
    %13 = vector.load %arg7[%c0_7, %c0_8] : memref<16x512xf32, #tpu.memory_space<vmem>>, vector<16x512xf32>
    %14 = arith.mulf %13, %12 : vector<16x512xf32>
    %15 = arith.subf %9, %14 : vector<16x512xf32>
    %c0_9 = arith.constant 0 : index
    %c0_10 = arith.constant 0 : index
    %16 = vector.load %arg6[%c0_9, %c0_10] : memref<16x512xf32, #tpu.memory_space<vmem>>, vector<16x512xf32>
    %17 = arith.mulf %15, %15 : vector<16x512xf32>
    %18 = arith.mulf %17, %6 : vector<16x512xf32>
    %19 = arith.addf %16, %18 : vector<16x512xf32>
    %c0_11 = arith.constant 0 : index
    %c0_12 = arith.constant 0 : index
    %20 = vector.load %arg6[%c0_11, %c0_12] : memref<16x512xf32, #tpu.memory_space<vmem>>, vector<16x512xf32>
    tpu.vector_store %arg6[%c0_11, %c0_12], %19 {strides = array<i32>} : memref<16x512xf32, #tpu.memory_space<vmem>>, vector<16x512xf32>,
    %c0_i32_13 = arith.constant 0 : i32
    %21 = arith.cmpi eq, %arg1, %c0_i32_13 : i32
    %22 = arith.extui %21 : i1 to i32
    %c0_i32_14 = arith.constant 0 : i32
    %23 = arith.cmpi ne, %22, %c0_i32_14 : i32
    scf.if %23 {
      %c0_15 = arith.constant 0 : index
      %c0_16 = arith.constant 0 : index
      %24 = vector.load %arg6[%c0_15, %c0_16] : memref<16x512xf32, #tpu.memory_space<vmem>>, vector<16x512xf32>
      %25 = tpu.iota {dimensions = array<i32: 1>} : vector<16x512xi32>
      %c3_i32 = arith.constant 3 : i32
      %26 = vector.broadcast %c3_i32 : i32 to vector<16x512xi32>
      %27 = arith.andi %25, %26 : vector<16x512xi32>
      %c0_i32_17 = arith.constant 0 : i32
      %28 = vector.broadcast %c0_i32_17 : i32 to vector<16x512xi32>
      %29 = arith.cmpi eq, %27, %28 : vector<16x512xi32>
      %cst_18 = arith.constant 0.000000e+00 : f32
      %30 = vector.broadcast %cst_18 : f32 to vector<16x512xf32>
      %31 = arith.select %29, %24, %30 : vector<16x512xi1>, vector<16x512xf32>
      %32 = vector.shape_cast %31 : vector<16x512xf32> to vector<1x16x512xf32>
      %cst_19 = arith.constant dense<0.000000e+00> : vector<1xf32>
      %33 = vector.multi_reduction <add>, %32, %cst_19 [1, 2] : vector<1x16x512xf32> to vector<1xf32>
      %34 = vector.shape_cast %33 : vector<1xf32> to vector<1x1x1xf32>
      %35 = vector.extract %34[0, 0, 0] : f32 from vector<1x1x1xf32>
      %c1_i32 = arith.constant 1 : i32
      %36 = vector.broadcast %c1_i32 : i32 to vector<16x512xi32>
      %37 = arith.cmpi eq, %27, %36 : vector<16x512xi32>
      %cst_20 = arith.constant 0.000000e+00 : f32
      %38 = vector.broadcast %cst_20 : f32 to vector<16x512xf32>
      %39 = arith.select %37, %24, %38 : vector<16x512xi1>, vector<16x512xf32>
      %40 = vector.shape_cast %39 : vector<16x512xf32> to vector<1x16x512xf32>
      %cst_21 = arith.constant dense<0.000000e+00> : vector<1xf32>
      %41 = vector.multi_reduction <add>, %40, %cst_21 [1, 2] : vector<1x16x512xf32> to vector<1xf32>
      %42 = vector.shape_cast %41 : vector<1xf32> to vector<1x1x1xf32>
      %43 = vector.extract %42[0, 0, 0] : f32 from vector<1x1x1xf32>
      %c2_i32 = arith.constant 2 : i32
      %44 = vector.broadcast %c2_i32 : i32 to vector<16x512xi32>
      %45 = arith.cmpi sge, %27, %44 : vector<16x512xi32>
      %cst_22 = arith.constant 0.000000e+00 : f32
      %46 = vector.broadcast %cst_22 : f32 to vector<16x512xf32>
      %47 = arith.select %45, %24, %46 : vector<16x512xi1>, vector<16x512xf32>
      %48 = vector.shape_cast %47 : vector<16x512xf32> to vector<1x16x512xf32>
      %cst_23 = arith.constant dense<0.000000e+00> : vector<1xf32>
      %49 = vector.multi_reduction <add>, %48, %cst_23 [1, 2] : vector<1x16x512xf32> to vector<1xf32>
      %50 = vector.shape_cast %49 : vector<1xf32> to vector<1x1x1xf32>
      %51 = vector.extract %50[0, 0, 0] : f32 from vector<1x1x1xf32>
      %52 = tpu.iota {dimensions = array<i32: 1>} : vector<8x128xi32>
      %c0_i32_24 = arith.constant 0 : i32
      %53 = vector.broadcast %c0_i32_24 : i32 to vector<8x128xi32>
      %54 = arith.cmpi eq, %52, %53 : vector<8x128xi32>
      %c1_i32_25 = arith.constant 1 : i32
      %55 = vector.broadcast %c1_i32_25 : i32 to vector<8x128xi32>
      %56 = arith.cmpi eq, %52, %55 : vector<8x128xi32>
      %c2_i32_26 = arith.constant 2 : i32
      %57 = vector.broadcast %c2_i32_26 : i32 to vector<8x128xi32>
      %58 = arith.cmpi eq, %52, %57 : vector<8x128xi32>
      %cst_27 = arith.constant 0.000000e+00 : f32
      %59 = vector.broadcast %51 : f32 to vector<8x128xf32>
      %60 = vector.broadcast %cst_27 : f32 to vector<8x128xf32>
      %61 = arith.select %58, %59, %60 : vector<8x128xi1>, vector<8x128xf32>
      %62 = vector.broadcast %43 : f32 to vector<8x128xf32>
      %63 = arith.select %56, %62, %61 : vector<8x128xi1>, vector<8x128xf32>
      %64 = vector.broadcast %35 : f32 to vector<8x128xf32>
      %65 = arith.select %54, %64, %63 : vector<8x128xi1>, vector<8x128xf32>
      %c0_28 = arith.constant 0 : index
      %c0_29 = arith.constant 0 : index
      %66 = vector.load %arg5[%c0_28, %c0_29] : memref<8x128xf32, #tpu.memory_space<vmem>>, vector<8x128xf32>
      tpu.vector_store %arg5[%c0_28, %c0_29], %65 {strides = array<i32>} : memref<8x128xf32, #tpu.memory_space<vmem>>, vector<8x128xf32>,
    } else {
    }
    return
  }
  func.func @transform_0(%arg0: i32, %arg1: i32) -> (i32, i32) {
    %c1_i32 = arith.constant 1 : i32
    %0 = arith.muli %arg0, %c1_i32 : i32
    %1 = arith.addi %0, %arg1 : i32
    %c0_i32 = arith.constant 0 : i32
    %c0_i32_0 = arith.constant 0 : i32
    return %1, %c0_i32 : i32, i32
  }
  func.func @transform_1(%arg0: i32, %arg1: i32) -> (i32, i32) {
    %c1_i32 = arith.constant 1 : i32
    %0 = arith.muli %arg0, %c1_i32 : i32
    %1 = arith.addi %0, %arg1 : i32
    %c0_i32 = arith.constant 0 : i32
    %c0_i32_0 = arith.constant 0 : i32
    return %1, %c0_i32 : i32, i32
  }
  func.func @transform_2(%arg0: i32, %arg1: i32) -> (i32, i32) {
    %c1_i32 = arith.constant 1 : i32
    %0 = arith.muli %arg0, %c1_i32 : i32
    %1 = arith.addi %0, %arg1 : i32
    %c0_i32 = arith.constant 0 : i32
    %c0_i32_0 = arith.constant 0 : i32
    return %1, %c0_i32 : i32, i32
  }
  func.func @transform_3(%arg0: i32, %arg1: i32) -> (i32, i32) {
    %c0_i32 = arith.constant 0 : i32
    %c0_i32_0 = arith.constant 0 : i32
    return %arg0, %c0_i32 : i32, i32
  }
}

</mosaic_0001>

<bundles_post_ra>
// kernel: consistency_loss_lrud.1
= control target key start
LH: loop header
LB: loop body
LE: loop exit
PB: predicated region body
PF: predicated region fallthrough
CT: control target
= control target key end

     0   :  { %s745_s12 = smov 0   ;;  %s747_s13 = smov 0   ;;  %s902_s0 = inlined_call_operand.vmem [shape: f32[32,512], index: 0, kind: input, shape index: {}]   ;;  %s903_s1 = inlined_call_operand.vmem [shape: f32[32,512], index: 1, kind: input, shape index: {}]   ;;  %s904_s2 = inlined_call_operand.vmem [shape: bf16[32,512], index: 2, kind: input, shape index: {}]   ;;  %s905_s3 = inlined_call_operand.vmem [shape: f32[16,128], index: 3, kind: output, shape index: {}]  }
   0x1   :  { %s749_s14 = smov 0  }
   0x2 LB: > { %s25_s15 = sadd.s32 1, %s718_s13  ;;  %p621_p0 = scmp.ge.s32.totalorder %s722_s14, 1  ;;  %s722_s14 = sphi %s749_s14, %s13_s14   ;;  %s718_s13 = sphi %s747_s13, %s907_s13   ;;  %s714_s12 = sphi %s745_s12, %s906_s12  }
   0x3   : > { %p27_p1 = scmp.ge.s32.totalorder %s25_s15, 2  ;;  %p187_p2 = scmp.lt.s32.totalorder %s722_s14, 3 }
   0x5   : > { %s909_s15 = smov (%p27_p1, %s25_s15), 0  ;;  %p188_p3 = pnand %p621_p0, %p187_p2 }
   0x6   : > { %s622_s16 = sshll.u32 (!%p188_p3), %s714_s12, 1  ;;  %p253_p5 = scmp.lt.s32.totalorder (!%p188_p3), %s714_s12, 1 }
   0x7   : > { %191 = sbr.rel (%p188_p3) target bundleno = 249 (0xf9), region = 32  ;;  %p228_p4 = scmp.lt.s32.totalorder (!%p188_p3), %s622_s16, 3 }
   0xc   : > { %s911_s16 = smov (!%p228_p4, %s622_s16), 3  ;;  %v269_v1 = vlaneseq  ;;  %v724_v49 = vmov 1.0   ;;  %s913_s12 = smov (!%p253_p5, %s714_s12), 1 }
   0xd   : > { %s634_s17 = sshll.u32 %s911_s16, 5  ;;  %s636_s24 = sshll.u32 %s911_s16, 4 }
   0xe   : > { %s232_s20 = scalar_lea.vmem %s902_s0, %s634_s17  ;;  %s775_s23 = scalar_lea.vmem %s903_s1, %s634_s17  ;;  %v777_v8 = vand.u32 127, %v269_v1 }
   0xf   : > { %v294_v0 = vld [vmem:[%s232_s20] sm:$0xff]  ;;  %v295_v2 = vld [vmem:[%s232_s20 + $0x8] sm:$0xff]  ;;  %v296_v3 = vld [vmem:[%s232_s20 + $0x10] sm:$0xff]  ;;  %s802_s27 = scalar_lea.vmem %s904_s2, %s636_s24  ;;  %s631_s30 = sshll.u32 %s913_s12, 3 }
  0x10   : > { %v297_v4 = vld [vmem:[%s232_s20 + $0x18] sm:$0xff]  ;;  %v322_v5 = vmul.f32 0.5, %v294_v0  ;;  %v298_v6 = vld [vmem:[%s232_s20 + $0x20] sm:$0xff]  ;;  %v323_v7 = vmul.f32 0.5, %v295_v2  ;;  %v299_v9 = vld [vmem:[%s232_s20 + $0x28] sm:$0xff]  ;;  %v324_v10 = vmul.f32 0.5, %v296_v3  ;;  %s256_s7 = scalar_lea.vmem %s905_s3, %s631_s30 }
  0x11   : > { %v300_v11 = vld [vmem:[%s232_s20 + $0x30] sm:$0xff]  ;;  %v325_v12 = vmul.f32 0.5, %v297_v4  ;;  %v301_v13 = vld [vmem:[%s232_s20 + $0x38] sm:$0xff]  ;;  %v326_v14 = vmul.f32 0.5, %v298_v6  ;;  %v302_v15 = vld [vmem:[%s775_s23] sm:$0xff]  ;;  %v327_v16 = vmul.f32 0.5, %v299_v9 }
  0x12   : > { %668 = vtanh.f32 %v322_v5  ;;  %v271_v17 = vadd.s32 128, %v777_v8  ;;  %v303_v18 = vld [vmem:[%s775_s23 + $0x8] sm:$0xff]  ;;  %v328_v19 = vmul.f32 0.5, %v300_v11  ;;  %v272_v20 = vadd.s32 256, %v777_v8  ;;  %v304_v22 = vld [vmem:[%s775_s23 + $0x10] sm:$0xff]  ;;  %v305_v24 = vld [vmem:[%s775_s23 + $0x18] sm:$0xff] }
  0x13   : > { %670 = vtanh.f32 %v323_v7  ;;  %v273_v21 = vadd.s32 384, %v777_v8  ;;  %v329_v23 = vmul.f32 0.5, %v301_v13  ;;  %v338_v25 = vmul.f32 0.5, %v302_v15  ;;  %v306_v27 = vld [vmem:[%s775_s23 + $0x20] sm:$0xff]  ;;  %v307_v31 = vld [vmem:[%s775_s23 + $0x28] sm:$0xff]  ;;  %v308_v36 = vld [vmem:[%s775_s23 + $0x30] sm:$0xff] }
  0x14   : > { %672 = vtanh.f32 %v324_v10  ;;  %v788_v26 = vand.u32 3, %v777_v8  ;;  %v339_v28 = vmul.f32 0.5, %v303_v18  ;;  %v791_v30 = vand.u32 3, %v271_v17  ;;  %v309_v39 = vld [vmem:[%s775_s23 + $0x38] sm:$0xff]  ;;  %v310_v46 = vld [vmem:[%s802_s27] sm:$0xff]  ;;  %v311_v51 = vld [vmem:[%s802_s27 + $0x8] sm:$0xff] }
  0x15   : > { %674 = vtanh.f32 %v325_v12  ;;  %v340_v32 = vmul.f32 0.5, %v304_v22  ;;  %v794_v34 = vand.u32 3, %v272_v20  ;;  %v796_v35 = vand.u32 3, %v273_v21  ;;  %v812_v54 = vld [vmem:[%s802_s27 + $0x10] sm:$0xff]  ;;  %v820_v58 = vld [vmem:[%s802_s27 + $0x18] sm:$0xff] }
  0x16   : > { %676 = vtanh.f32 %v326_v14  ;;  %v341_v37 = vmul.f32 0.5, %v305_v24  ;;  %v342_v40 = vmul.f32 0.5, %v306_v27  ;;  %vm278_vm0 = vcmp.lt.s32.totalorder %v788_v26, 2 }
  0x17   : > { %678 = vtanh.f32 %v327_v16  ;;  %v343_v42 = vmul.f32 0.5, %v307_v31  ;;  %vm279_vm1 = vcmp.lt.s32.totalorder %v791_v30, 2  ;;  %v344_v44 = vmul.f32 0.5, %v308_v36 }
  0x18   : > { %v669_v29 = vpop.eup %668  ;;  %680 = vtanh.f32 %v328_v19  ;;  %vm280_vm2 = vcmp.lt.s32.totalorder %v794_v34, 2  ;;  %vm281_vm3 = vcmp.lt.s32.totalorder %v796_v35, 2  ;;  %v345_v47 = vmul.f32 0.5, %v309_v39 }
  0x19   : > { %v671_v33 = vpop.eup %670  ;;  %682 = vtanh.f32 %v329_v23  ;;  %v282_v50 = vsel %vm278_vm0, -1.0, %v724_v49  ;;  %v283_v53 = vsel %vm279_vm1, -1.0, %v724_v49  ;;  %vm438_vm4 = vcmp.eq.s32.totalorder %v788_v26, 0 }
  0x1a   : > { %v673_v38 = vpop.eup %672  ;;  %684 = vtanh.f32 %v338_v25  ;;  %v284_v56 = vsel %vm280_vm2, -1.0, %v724_v49  ;;  %v285_v57 = vsel %vm281_vm3, -1.0, %v724_v49  ;;  %v314_v59 = vunpack.c.l.bf16 %v310_v46 }
  0x1b   : > { %v675_v41 = vpop.eup %674  ;;  %686 = vtanh.f32 %v339_v28  ;;  %v315_v61 = vunpack.c.h.bf16 %v310_v46  ;;  %v316_v62 = vunpack.c.l.bf16 %v311_v51  ;;  %v317_v1 = vunpack.c.h.bf16 %v311_v51 }
  0x1c   : > { %v677_v43 = vpop.eup %676  ;;  %688 = vtanh.f32 %v340_v32  ;;  %v318_v2 = vunpack.c.l.bf16 %v812_v54  ;;  %v319_v3 = vunpack.c.h.bf16 %v812_v54  ;;  %vm494_vm5 = vcmp.ge.s32.totalorder %v788_v26, 2 }
  0x1d   : > { %v679_v45 = vpop.eup %678  ;;  %690 = vtanh.f32 %v341_v37  ;;  %v320_v6 = vunpack.c.l.bf16 %v820_v58  ;;  %v321_v7 = vunpack.c.h.bf16 %v820_v58  ;;  %vm439_vm6 = vcmp.eq.s32.totalorder %v791_v30, 0 }
  0x1e   : > { %v681_v48 = vpop.eup %680  ;;  %692 = vtanh.f32 %v342_v40  ;;  %vm440_vm7 = vcmp.eq.s32.totalorder %v794_v34, 0  ;;  %vm441_vm8 = vcmp.eq.s32.totalorder %v796_v35, 0  ;;  %vm495_vm9 = vcmp.ge.s32.totalorder %v791_v30, 2 }
  0x1f   : > { %v683_v52 = vpop.eup %682  ;;  %694 = vtanh.f32 %v343_v42  ;;  %vm496_vm10 = vcmp.ge.s32.totalorder %v794_v34, 2  ;;  %vm497_vm11 = vcmp.ge.s32.totalorder %v796_v35, 2  ;;  %vm466_vm12 = vcmp.eq.s32.totalorder %v788_v26, 1 }
  0x20   : > { %v685_v55 = vpop.eup %684  ;;  %696 = vtanh.f32 %v344_v44  ;;  %vm467_vm13 = vcmp.eq.s32.totalorder %v791_v30, 1  ;;  %vm468_vm14 = vcmp.eq.s32.totalorder %v794_v34, 1  ;;  %vm469_vm15 = vcmp.eq.s32.totalorder %v796_v35, 1 }
  0x21   : > { %v687_v60 = vpop.eup %686  ;;  %698 = vtanh.f32 %v345_v47  ;;  %v362_v63 = vmul.f32 %v685_v55, %v282_v50  ;;  %vm524_vm0 = vcmp.eq.s32.totalorder %v777_v8, 2  ;;  %vm523_vm1 = vcmp.eq.s32.totalorder %v777_v8, 1 }
  0x22   : > { %v689_v0 = vpop.eup %688  ;;  %v363_v4 = vmul.f32 %v687_v60, %v283_v53  ;;  %vm522_vm2 = vcmp.eq.s32.totalorder %v777_v8, 0 }
  0x23   : > { %v691_v5 = vpop.eup %690  ;;  %v364_v9 = vmul.f32 %v689_v0, %v284_v56  ;;  %v370_v10 = vsub.f32 %v669_v29, %v362_v63 }
  0x24   : > { %v693_v11 = vpop.eup %692  ;;  %v365_v12 = vmul.f32 %v691_v5, %v285_v57  ;;  %v371_v13 = vsub.f32 %v671_v33, %v363_v4 }
  0x25   : > { %v695_v14 = vpop.eup %694  ;;  %v366_v15 = vmul.f32 %v693_v11, %v282_v50  ;;  %v372_v16 = vsub.f32 %v673_v38, %v364_v9  ;;  %v386_v17 = vmul.f32 %v370_v10, %v370_v10 }
  0x26   : > { %v697_v18 = vpop.eup %696  ;;  %v367_v19 = vmul.f32 %v695_v14, %v283_v53  ;;  %v373_v20 = vsub.f32 %v675_v41, %v365_v12  ;;  %v387_v21 = vmul.f32 %v371_v13, %v371_v13 }
  0x27   : > { %v699_v22 = vpop.eup %698  ;;  %v368_v23 = vmul.f32 %v697_v18, %v284_v56  ;;  %v374_v24 = vsub.f32 %v677_v43, %v366_v15  ;;  %v388_v25 = vmul.f32 %v372_v16, %v372_v16  ;;  %v394_v27 = vmul.f32 %v386_v17, %v314_v59 }
  0x28   : > { %v369_v28 = vmul.f32 %v699_v22, %v285_v57  ;;  %v375_v29 = vsub.f32 %v679_v45, %v367_v19  ;;  %v389_v31 = vmul.f32 %v373_v20, %v373_v20  ;;  %v395_v32 = vmul.f32 %v387_v21, %v315_v61 }
  0x29   : > { %v376_v33 = vsub.f32 %v681_v48, %v368_v23  ;;  %v390_v36 = vmul.f32 %v374_v24, %v374_v24  ;;  %v396_v37 = vmul.f32 %v388_v25, %v316_v62  ;;  %v442_v38 = vsel %vm438_vm4, %v394_v27, 0.0 }
  0x2a   : > { %v377_v39 = vsub.f32 %v683_v52, %v369_v28  ;;  %v391_v40 = vmul.f32 %v375_v29, %v375_v29  ;;  %v397_v41 = vmul.f32 %v389_v31, %v317_v1  ;;  %v443_v42 = vsel %vm439_vm6, %v395_v32, 0.0 }
  0x2b   : > { %v392_v44 = vmul.f32 %v376_v33, %v376_v33  ;;  %v398_v43 = vmul.f32 %v390_v36, %v318_v2  ;;  %v444_v46 = vsel %vm440_vm7, %v396_v37, 0.0  ;;  %v450_v45 = vadd.f32 %v443_v42, %v442_v38 }
  0x2c   : > { %v393_v47 = vmul.f32 %v377_v39, %v377_v39  ;;  %v399_v49 = vmul.f32 %v391_v40, %v319_v3  ;;  %v445_v48 = vsel %vm441_vm8, %v397_v41, 0.0  ;;  %v498_v51 = vsel %vm494_vm5, %v394_v27, 0.0 }
  0x2d   : > { %v451_v50 = vadd.f32 %v450_v45, %v444_v46  ;;  %v499_v52 = vsel %vm495_vm9, %v395_v32, 0.0  ;;  %v400_v53 = vmul.f32 %v392_v44, %v320_v6  ;;  %v446_v54 = vsel %vm438_vm4, %v398_v43, 0.0 }
  0x2e   : > { %v500_v56 = vsel %vm496_vm10, %v396_v37, 0.0  ;;  %v401_v57 = vmul.f32 %v393_v47, %v321_v7  ;;  %v447_v58 = vsel %vm439_vm6, %v399_v49, 0.0  ;;  %v506_v59 = vadd.f32 %v499_v52, %v498_v51 }
  0x2f   : > { %v452_v55 = vadd.f32 %v451_v50, %v445_v48  ;;  %v501_v61 = vsel %vm497_vm11, %v397_v41, 0.0  ;;  %v470_v62 = vsel %vm466_vm12, %v394_v27, 0.0  ;;  %v471_v63 = vsel %vm467_vm13, %v395_v32, 0.0 }
  0x30   : > { %v448_v0 = vsel %vm440_vm7, %v400_v53, 0.0  ;;  %v507_v1 = vadd.f32 %v506_v59, %v500_v56  ;;  %v472_v2 = vsel %vm468_vm14, %v396_v37, 0.0  ;;  %v502_v4 = vsel %vm494_vm5, %v398_v43, 0.0 }
  0x31   : > { %v453_v60 = vadd.f32 %v452_v55, %v446_v54  ;;  %v478_v5 = vadd.f32 %v471_v63, %v470_v62  ;;  %v449_v6 = vsel %vm441_vm8, %v401_v57, 0.0  ;;  %v473_v9 = vsel %vm469_vm15, %v397_v41, 0.0 }
  0x32   : > { %v508_v7 = vadd.f32 %v507_v1, %v501_v61  ;;  %v503_v11 = vsel %vm495_vm9, %v399_v49, 0.0  ;;  %v474_v14 = vsel %vm466_vm12, %v398_v43, 0.0  ;;  %v504_v16 = vsel %vm496_vm10, %v400_v53, 0.0 }
  0x33   : > { %v454_v3 = vadd.f32 %v453_v60, %v447_v58  ;;  %v479_v12 = vadd.f32 %v478_v5, %v472_v2  ;;  %v475_v19 = vsel %vm467_vm13, %v399_v49, 0.0  ;;  %v505_v20 = vsel %vm497_vm11, %v401_v57, 0.0 }
  0x34   : > { %v509_v13 = vadd.f32 %v508_v7, %v502_v4  ;;  %v476_v23 = vsel %vm468_vm14, %v400_v53, 0.0  ;;  %v477_v25 = vsel %vm469_vm15, %v401_v57, 0.0 }
  0x35   : > { %v455_v10 = vadd.f32 %v454_v3, %v448_v0  ;;  %v480_v17 = vadd.f32 %v479_v12, %v473_v9 }
  0x36   : > { %v510_v18 = vadd.f32 %v509_v13, %v503_v11 }
  0x37   : > { %v456_v15 = vadd.f32 %v455_v10, %v449_v6  ;;  %v481_v21 = vadd.f32 %v480_v17, %v474_v14 }
  0x38   : > { %v511_v22 = vadd.f32 %v510_v18, %v504_v16 }
  0x39   : > { %457 = vadd.xlane.f32.xlu0 %v456_v15  ;;  %v482_v26 = vadd.f32 %v481_v21, %v475_v19 }
  0x3a   : > { %v512_v24 = vadd.f32 %v511_v22, %v505_v20 }
  0x3b   : > { %v483_v27 = vadd.f32 %v482_v26, %v476_v23 }
  0x3c   : > { %513 = vadd.xlane.f32.xlu1 %v512_v24 }
  0x3d   : > { %v484_v28 = vadd.f32 %v483_v27, %v477_v25 }
  0x41   : > { %485 = vadd.xlane.f32.xlu0 %v484_v28 }
  0xac   : > { %v458_v30 = vpop.xlane.xlu0 %457 }
  0xad   : > { %v459_v29 = vrot.slane %v458_v30, 4 }
  0xaf   : > { %v460_v31 = vadd.f32 %v459_v29, %v458_v30  ;;  %v514_v33 = vpop.xlane.xlu1 %513 }
  0xb0   : > { %v515_v36 = vrot.slane %v514_v33, 4 }
  0xb1   : > { %v461_v32 = vrot.slane %v460_v31, 2 }
  0xb2   : > { %v516_v38 = vadd.f32 %v515_v36, %v514_v33 }
  0xb3   : > { %v462_v37 = vadd.f32 %v461_v32, %v460_v31 }
  0xb4   : > { %v486_v39 = vpop.xlane.xlu0 %485  ;;  %v517_v41 = vrot.slane %v516_v38, 2 }
  0xb5   : > { %v487_v34 = vrot.slane %v486_v39, 4  ;;  %v463_v40 = vrot.slane %v462_v37, 1 }
  0xb6   : > { %v518_v44 = vadd.f32 %v517_v41, %v516_v38 }
  0xb7   : > { %v488_v35 = vadd.f32 %v487_v34, %v486_v39  ;;  %v464_v42 = vadd.f32 %v463_v40, %v462_v37 }
  0xb8   : > { %v519_v45 = vrot.slane %v518_v44, 1 }
  0xb9   : > { %v489_v43 = vrot.slane %v488_v35, 2  ;;  %637 = vpush %v464_v42 }
  0xba   : > { %v520_v48 = vadd.f32 %v519_v45, %v518_v44 }
  0xbb   : > { %v490_v46 = vadd.f32 %v489_v43, %v488_v35 }
  0xbd   : > { %v491_v47 = vrot.slane %v490_v46, 1 }
  0xbf   : > { %v492_v49 = vadd.f32 %v491_v47, %v490_v46 }
  0xc1   : > { %639 = vpush %v492_v49 }
  0xc2   : > { %641 = vpush %v520_v48 }
  0xea   : > { %s638_s28 = spop %637 }
  0xeb   : > { %v529_v53 = vstv %s638_s28 }
  0xf2   : > { %s640_s29 = spop %639 }
  0xf3   : > { %v527_v50 = vstv %s640_s29  ;;  %s642_s4 = spop %641 }
  0xf4   : > { %v525_v51 = vstv %s642_s4 }
  0xf5   : > { %v526_v52 = vsel %vm524_vm0, %v525_v51, 0.0 }
  0xf6   : > { %v528_v54 = vsel %vm523_vm1, %v527_v50, %v526_v52 }
  0xf7   : > { %v530_v55 = vsel %vm522_vm2, %v529_v53, %v528_v54 }
  0xf8   : > { %531 = vst [vmem:[%s256_s7] sm:$0xff] %v530_v55 }
  0xf9 PF: > { %s13_s14 = sadd.s32 1, %s722_s14   ;;  %s906_s12 = smov %s718_s13 }
  0xfa   : > { %p10_p6 = scmp.ge.s32.totalorder %s13_s14, 4   ;;  %s907_s13 = smov %s909_s15 }
  0xfc   :  { %12 = sbr.rel (!%p10_p6) target bundleno = 2 (0x2), region = 76 }

</bundles_post_ra>
